<compile_context>
chip_gen: v7x
topology: tpu7x:2x2x1
jax: 0.10.0
libtpu: 0.0.40
codegen_flags: <defaults>
</compile_context>

<pallas_src>
import functools

import jax
import jax.numpy as jnp
from jax.experimental import pallas as pl
from jax.experimental.pallas import tpu as pltpu

_LANE = 128


def _round_up(x, m):
    return (x + m - 1) // m * m


def _rbfsvm_kernel(x_ref, w_ref, b_ref, g_ref, o_ref, *, num_classes, batch):
    """Whole forward in one shot on (padded) VMEM-resident operands."""
    x = x_ref[...]                      # (B, Dp)  f32
    w = w_ref[...]                      # (Cp, Dp) f32, rows >= num_classes are zero
    b = b_ref[...]                      # (1, Cp)  f32, lanes >= num_classes are zero
    gamma = g_ref[0, 0]                 # scalar from SMEM

    padded_classes = w.shape[0]

    # Pairwise squared distances via ||x||^2 + ||w||^2 - 2 x.w^T (MXU path,
    # contraction axis Dp is 128-aligned).
    xx = jnp.sum(x * x, axis=-1, keepdims=True)                      # (B, 1)
    ww = jnp.sum(w * w, axis=-1)                                     # (Cp,)
    xw = jax.lax.dot_general(
        x, w,
        dimension_numbers=(((1,), (1,)), ((), ())),
        preferred_element_type=jnp.float32)                          # (B, Cp)
    d2 = jnp.maximum(xx + ww[None, :] - 2.0 * xw, 0.0)
    dists = jnp.sqrt(d2)                                             # (B, Cp)

    # Global mean / unbiased variance over the REAL (batch x num_classes)
    # entries only (torch.mean / torch.std defaults). Padded class columns
    # are excluded via a lane mask.
    n = batch * num_classes
    if num_classes == padded_classes:
        sum_d = jnp.sum(dists)
    else:
        col = jax.lax.broadcasted_iota(jnp.int32, dists.shape, 1)
        valid = col < num_classes
        sum_d = jnp.sum(jnp.where(valid, dists, 0.0))
    mean = sum_d / n
    centered = dists - mean
    c2 = centered * centered
    if num_classes == padded_classes:
        sum_c2 = jnp.sum(c2)
    else:
        sum_c2 = jnp.sum(jnp.where(valid, c2, 0.0))
    var = sum_c2 / (n - 1)

    # dn^2 == centered^2 / var  ->  no sqrt and no full (B,C) divide needed.
    # Exact scalar reciprocal (approx EUP recip would break 1e-5 tolerance).
    inv_var = 1.0 / var

    kernel_matrix = jnp.exp((-gamma * inv_var) * c2)
    o_ref[...] = (kernel_matrix + b).astype(o_ref.dtype)


def rbfsvm_forward(x, weights, bias, gamma):
    """x: (B, D) f32, weights: (C, D) f32, bias: (C,) f32 -> (B, C) f32."""
    B, D = x.shape
    C, _ = weights.shape
    Dp = _round_up(D, _LANE)
    Cp = _round_up(C, _LANE)

    # Lane-dense padding (zero feature columns do not change distances; padded
    # class columns are masked inside the kernel and sliced off below).
    x_p = jnp.pad(x.astype(jnp.float32), ((0, 0), (0, Dp - D)))
    w_p = jnp.pad(weights.astype(jnp.float32), ((0, Cp - C), (0, Dp - D)))
    b_p = jnp.pad(bias.astype(jnp.float32).reshape(1, C), ((0, 0), (0, Cp - C)))
    g = jnp.asarray(gamma, dtype=jnp.float32).reshape(1, 1)

    kernel = functools.partial(_rbfsvm_kernel, num_classes=C, batch=B)

    # TODO(synk): for large B/C that exceed VMEM (esp. v7x's 64 MiB), tile B
    # with a grid and do a two-pass global mean/var instead of one block.
    out_p = pl.pallas_call(
        kernel,
        out_shape=jax.ShapeDtypeStruct((B, Cp), jnp.float32),
        in_specs=[
            pl.BlockSpec(memory_space=pltpu.MemorySpace.VMEM),   # x (B, Dp)
            pl.BlockSpec(memory_space=pltpu.MemorySpace.VMEM),   # W (Cp, Dp)
            pl.BlockSpec(memory_space=pltpu.MemorySpace.VMEM),   # bias (1, Cp)
            pl.BlockSpec(memory_space=pltpu.MemorySpace.SMEM),   # gamma (1, 1)
        ],
        out_specs=pl.BlockSpec(memory_space=pltpu.MemorySpace.VMEM),
    )(x_p, w_p, b_p, g)
    return out_p[:, :C]


if __name__ == "__main__":
    # Small, deterministic setup consistent with RBFSVM(input_size, num_classes, gamma).
    input_size = 32
    num_classes = 16
    batch = 8
    gamma = 0.5

    key = jax.random.PRNGKey(0)
    kx, kw = jax.random.split(key)
    x = jax.random.normal(kx, (batch, input_size), dtype=jnp.float32)
    weights = jax.random.normal(kw, (num_classes, input_size), dtype=jnp.float32)  # randn init
    bias = jnp.zeros((num_classes,), dtype=jnp.float32)                            # zeros init

    fwd = jax.jit(rbfsvm_forward)
    out = jax.block_until_ready(fwd(x, weights, bias, gamma))

    # Pure-JAX reference check (same semantics as the PyTorch forward).
    d = jnp.sqrt(jnp.maximum(
        jnp.sum(x * x, -1, keepdims=True)
        + jnp.sum(weights * weights, -1)[None, :]
        - 2.0 * x @ weights.T, 0.0))
    n = d.size
    mean = jnp.mean(d)
    std = jnp.sqrt(jnp.sum((d - mean) ** 2) / (n - 1))
    ref = jnp.exp(-gamma * ((d - mean) / std) ** 2) + bias[None, :]
    assert out.shape == ref.shape, "shape mismatch"
    assert jnp.allclose(out, ref, atol=1e-5, rtol=1e-5), "mismatch vs reference"

    print("KERNEL_OK")
</pallas_src>

<mosaic_0001>
module attributes {stable_mosaic.version = 11 : i64} {
  func.func @_rbfsvm_kernel(%arg0: memref<8x128xf32, #tpu.memory_space<vmem>>, %arg1: memref<128x128xf32, #tpu.memory_space<vmem>>, %arg2: memref<1x128xf32, #tpu.memory_space<vmem>>, %arg3: memref<1x1xf32, #tpu.memory_space<smem>>, %arg4: memref<8x128xf32, #tpu.memory_space<vmem>>) attributes {dimension_semantics = [], scalar_prefetch = 0 : i64, scratch_operands = 0 : i64, tpu.core_type = #tpu.core_type<tc>} {
    %c0 = arith.constant 0 : index
    %c0_0 = arith.constant 0 : index
    %0 = vector.load %arg0[%c0, %c0_0] : memref<8x128xf32, #tpu.memory_space<vmem>>, vector<8x128xf32>
    %c0_1 = arith.constant 0 : index
    %c0_2 = arith.constant 0 : index
    %1 = vector.load %arg1[%c0_1, %c0_2] : memref<128x128xf32, #tpu.memory_space<vmem>>, vector<128x128xf32>
    %c0_3 = arith.constant 0 : index
    %c0_4 = arith.constant 0 : index
    %2 = vector.load %arg2[%c0_3, %c0_4] : memref<1x128xf32, #tpu.memory_space<vmem>>, vector<1x128xf32>
    %c0_5 = arith.constant 0 : index
    %c0_6 = arith.constant 0 : index
    %3 = memref.load %arg3[%c0_5, %c0_6] : memref<1x1xf32, #tpu.memory_space<smem>>
    %4 = arith.mulf %0, %0 : vector<8x128xf32>
    %cst = arith.constant dense<0.000000e+00> : vector<8xf32>
    %5 = vector.multi_reduction <add>, %4, %cst [1] : vector<8x128xf32> to vector<8xf32>
    %6 = vector.shape_cast %5 : vector<8xf32> to vector<8x1xf32>
    %7 = arith.mulf %1, %1 : vector<128x128xf32>
    %cst_7 = arith.constant dense<0.000000e+00> : vector<128xf32>
    %8 = vector.multi_reduction <add>, %7, %cst_7 [1] : vector<128x128xf32> to vector<128xf32>
    %cst_8 = arith.constant dense<0.000000e+00> : vector<8x128xf32>
    %9 = tpu.matmul %0, %1, %cst_8 {dimension_numbers = #tpu.dot_dimension_numbers<[1], [1], [0], [0], [0, 0, 1, 0], [], []>} : vector<8x128xf32>, vector<128x128xf32>, vector<8x128xf32> -> vector<8x128xf32>
    %10 = vector.shape_cast %8 : vector<128xf32> to vector<1x128xf32>
    %11 = vector.broadcast %6 : vector<8x1xf32> to vector<8x128xf32>
    %12 = vector.broadcast %10 : vector<1x128xf32> to vector<8x128xf32>
    %13 = arith.addf %11, %12 : vector<8x128xf32>
    %cst_9 = arith.constant 2.000000e+00 : f32
    %14 = vector.broadcast %cst_9 : f32 to vector<8x128xf32>
    %15 = arith.mulf %14, %9 : vector<8x128xf32>
    %16 = arith.subf %13, %15 : vector<8x128xf32>
    %cst_10 = arith.constant 0.000000e+00 : f32
    %17 = vector.broadcast %cst_10 : f32 to vector<8x128xf32>
    %18 = arith.maximumf %16, %17 : vector<8x128xf32>
    %19 = math.sqrt %18 : vector<8x128xf32>
    %20 = tpu.iota {dimensions = array<i32: 1>} : vector<8x128xi32>
    %c16_i32 = arith.constant 16 : i32
    %21 = vector.broadcast %c16_i32 : i32 to vector<8x128xi32>
    %22 = arith.cmpi slt, %20, %21 : vector<8x128xi32>
    %cst_11 = arith.constant 0.000000e+00 : f32
    %23 = vector.broadcast %cst_11 : f32 to vector<8x128xf32>
    %24 = arith.select %22, %19, %23 : vector<8x128xi1>, vector<8x128xf32>
    %25 = vector.shape_cast %24 : vector<8x128xf32> to vector<1x8x128xf32>
    %cst_12 = arith.constant dense<0.000000e+00> : vector<1xf32>
    %26 = vector.multi_reduction <add>, %25, %cst_12 [1, 2] : vector<1x8x128xf32> to vector<1xf32>
    %27 = vector.shape_cast %26 : vector<1xf32> to vector<1x1x1xf32>
    %28 = vector.extract %27[0, 0, 0] : f32 from vector<1x1x1xf32>
    %cst_13 = arith.constant 1.280000e+02 : f32
    %29 = arith.divf %28, %cst_13 : f32
    %30 = vector.broadcast %29 : f32 to vector<8x128xf32>
    %31 = arith.subf %19, %30 : vector<8x128xf32>
    %32 = arith.mulf %31, %31 : vector<8x128xf32>
    %cst_14 = arith.constant 0.000000e+00 : f32
    %33 = vector.broadcast %cst_14 : f32 to vector<8x128xf32>
    %34 = arith.select %22, %32, %33 : vector<8x128xi1>, vector<8x128xf32>
    %35 = vector.shape_cast %34 : vector<8x128xf32> to vector<1x8x128xf32>
    %cst_15 = arith.constant dense<0.000000e+00> : vector<1xf32>
    %36 = vector.multi_reduction <add>, %35, %cst_15 [1, 2] : vector<1x8x128xf32> to vector<1xf32>
    %37 = vector.shape_cast %36 : vector<1xf32> to vector<1x1x1xf32>
    %38 = vector.extract %37[0, 0, 0] : f32 from vector<1x1x1xf32>
    %cst_16 = arith.constant 1.270000e+02 : f32
    %39 = arith.divf %38, %cst_16 : f32
    %cst_17 = arith.constant 1.000000e+00 : f32
    %40 = arith.divf %cst_17, %39 : f32
    %cst_18 = arith.constant 0.000000e+00 : f32
    %41 = arith.subf %cst_18, %3 : f32
    %42 = arith.mulf %41, %40 : f32
    %43 = vector.broadcast %42 : f32 to vector<8x128xf32>
    %44 = arith.mulf %43, %32 : vector<8x128xf32>
    %45 = math.exp %44 : vector<8x128xf32>
    %46 = vector.broadcast %2 : vector<1x128xf32> to vector<8x128xf32>
    %47 = arith.addf %45, %46 : vector<8x128xf32>
    %c0_19 = arith.constant 0 : index
    %c0_20 = arith.constant 0 : index
    %48 = vector.load %arg4[%c0_19, %c0_20] : memref<8x128xf32, #tpu.memory_space<vmem>>, vector<8x128xf32>
    tpu.vector_store %arg4[%c0_19, %c0_20], %47 {strides = array<i32>} : memref<8x128xf32, #tpu.memory_space<vmem>>, vector<8x128xf32>,
    return
  }
}

</mosaic_0001>

<bundles_post_ra>
// kernel: rbfsvm_forward.1
= control target key start
LH: loop header
LB: loop body
LE: loop exit
PB: predicated region body
PF: predicated region fallthrough
CT: control target
= control target key end

     0   :  { %v488_v3 = vmov 0.0|0.0   ;;  %vm489_vm0 = vmmov 0   ;;  %v490_v5 = vmov 0.0   ;;  %s635_s0 = inlined_call_operand.vmem [shape: f32[8,128], index: 0, kind: input, shape index: {}]   ;;  %s636_s1 = inlined_call_operand.vmem [shape: f32[128,128], index: 1, kind: input, shape index: {}]   ;;  %s637_s2 = inlined_call_operand.vmem [shape: f32[1,128], index: 2, kind: input, shape index: {}]   ;;  %s638_s3 = inlined_call_operand.<no memory space> [shape: f32[1,1], index: 3, kind: input, shape index: {}]   ;;  %s639_s4 = inlined_call_operand.hbm [shape: f32[8,128], index: 4, kind: output, shape index: {}]  }
   0x1   :  { %v20_v0 = vld [vmem:[%s636_s1] sm:$0xff]  ;;  %v21_v1 = vld [vmem:[%s636_s1 + $0x8] sm:$0xff]  ;;  %v22_v2 = vld [vmem:[%s636_s1 + $0x10] sm:$0xff]  ;;  %424 = vmatprep.subr.bf16.mxu0 %v488_v3  ;;  %421 = vmatprep.mubr.msk.f32.mxu0 %vm489_vm0, %v490_v5 }
   0x2   :  { %v425_v4 = vpack.c.bf16 %v21_v1, %v20_v0  ;;  %v41_v6 = vmul.f32 %v20_v0, %v20_v0  ;;  %v43_v7 = vmul.f32 %v22_v2, %v22_v2  ;;  %v23_v8 = vld [vmem:[%s636_s1 + $0x18] sm:$0xff]  ;;  %v42_v9 = vmul.f32 %v21_v1, %v21_v1 }
   0x3   :  { %v44_v10 = vmul.f32 %v23_v8, %v23_v8 }
   0x4   :  { %426 = vmatpush3.bf16.xpose.msra.mxu0 %v425_v4  ;;  %57 = vadd.xlane.f32.xlu0 %v41_v6 }
   0x5   :  { %427 = vmatprep.subr.bf16.mxu0 %v488_v3  ;;  %61 = vadd.xlane.f32.xlu1 %v43_v7 }
   0x6   :  { %10 = vsyncpa [#allocation4], 0  ;;  %v24_v11 = vld [vmem:[%s636_s1 + $0x20] sm:$0xff]  ;;  %v428_v12 = vpack.c.bf16 %v23_v8, %v22_v2  ;;  %v25_v13 = vld [vmem:[%s636_s1 + $0x28] sm:$0xff]  ;;  %v175_v44 = vlaneseq  ;;  %vm186_vm1 = vcmask 130112   ;;  %vm193_vm2 = vcmask 195712  }
   0x7   :  { %v45_v14 = vmul.f32 %v24_v11, %v24_v11  ;;  %v46_v15 = vmul.f32 %v25_v13, %v25_v13  ;;  %v26_v16 = vld [vmem:[%s636_s1 + $0x30] sm:$0xff]  ;;  %v27_v17 = vld [vmem:[%s636_s1 + $0x38] sm:$0xff]  ;;  %v28_v20 = vld [vmem:[%s636_s1 + $0x40] sm:$0xff]  ;;  %v431_v21 = vpack.c.bf16 %v25_v13, %v24_v11  ;;  %vm200_vm3 = vcmask 261312   ;;  %s343_s27 = ssub.f32 0.0, %s638_s3  ;;  %s491_s6 = smov [#allocation3]  }
   0x8   :  { %59 = vadd.xlane.f32.xlu0 %v42_v9  ;;  %v47_v18 = vmul.f32 %v26_v16, %v26_v16  ;;  %v48_v19 = vmul.f32 %v27_v17, %v27_v17  ;;  %v29_v22 = vld [vmem:[%s636_s1 + $0x48] sm:$0xff]  ;;  %v49_v23 = vmul.f32 %v28_v20, %v28_v20  ;;  %v30_v25 = vld [vmem:[%s636_s1 + $0x50] sm:$0xff]  ;;  %v31_v26 = vld [vmem:[%s636_s1 + $0x58] sm:$0xff]  ;;  %v434_v30 = vpack.c.bf16 %v27_v17, %v26_v16  ;;  %s363_s7 = sshll.u32 %s491_s6, 4  ;;  %s364_s7 = int_to_ptr.vmem [resolvable:$true] %s363_s7 }
   0x9   :  { %63 = vadd.xlane.f32.xlu1 %v44_v10  ;;  %v50_v24 = vmul.f32 %v29_v22, %v29_v22  ;;  %v51_v27 = vmul.f32 %v30_v25, %v30_v25  ;;  %v52_v28 = vmul.f32 %v31_v26, %v31_v26  ;;  %v32_v29 = vld [vmem:[%s636_s1 + $0x60] sm:$0xff]  ;;  %v33_v31 = vld [vmem:[%s636_s1 + $0x68] sm:$0xff]  ;;  %v34_v34 = vld [vmem:[%s636_s1 + $0x70] sm:$0xff]  ;;  %v437_v39 = vpack.c.bf16 %v29_v22, %v28_v20  ;;  %s464_s8 = scalar_lea.vmem %s364_s7, 128  ;;  %p469_p1 = scmp.lt.s32.totalorder %s364_s7, %s364_s7 }
   0xa   :  { %v53_v32 = vmul.f32 %v32_v29, %v32_v29  ;;  %v54_v33 = vmul.f32 %v33_v31, %v33_v31  ;;  %v35_v35 = vld [vmem:[%s636_s1 + $0x78] sm:$0xff]  ;;  %v55_v36 = vmul.f32 %v34_v34, %v34_v34  ;;  %v19_v38 = vld [vmem:[%s635_s0] sm:$0xff]  ;;  %v440_v41 = vpack.c.bf16 %v31_v26, %v30_v25  ;;  %p465_p0 = scmp.ne.s32.totalorder %s364_s7, %s464_s8  ;;  %p470_p2 = scmp.lt.s32.totalorder %s464_s8, %s464_s8 }
   0xb   :  { %v56_v37 = vmul.f32 %v35_v35, %v35_v35  ;;  %v38_v40 = vmul.f32 %v19_v38, %v19_v38  ;;  %v443_v42 = vpack.c.bf16 %v33_v31, %v32_v29  ;;  %v446_v43 = vpack.c.bf16 %v35_v35, %v34_v34 }
   0xc   :  { %429 = vmatpush3.bf16.xpose.msra.mxu0 %v428_v12  ;;  %65 = vadd.xlane.f32.xlu0 %v45_v14  ;;  %v576_v45 = vand.u32 127, %v175_v44  ;;  %v578_v46 = vshrl.u32 %v175_v44, 7  ;;  %vm207_vm4 = vcmask 326912   ;;  %vm214_vm5 = vcmask 392512   ;;  %p471_p3 = por %p470_p2, %p469_p1 }
   0xd   :  { %430 = vmatprep.subr.bf16.mxu0 %v488_v3  ;;  %67 = vadd.xlane.f32.xlu1 %v46_v15  ;;  %vm221_vm6 = vcmask 458112   ;;  %vm228_vm7 = vcmask 523712   ;;  %vm235_vm8 = vcmask 589312   ;;  %vm242_vm9 = vcmask 654912  }
   0xe   :  { %v181_v47 = vadd.s32 4294967288, %v576_v45  ;;  %v188_v49 = vadd.s32 4294967280, %v576_v45  ;;  %v179_v50 = vsub.s32 %v576_v45, %v578_v46  ;;  %v195_v53 = vadd.s32 4294967272, %v576_v45  ;;  %p472_p4 = pnand %p471_p3, %p465_p0 }
   0xf   :  { %v202_v58 = vadd.s32 4294967264, %v576_v45  ;;  %v209_v63 = vadd.s32 4294967256, %v576_v45  ;;  %v216_v4 = vadd.s32 4294967248, %v576_v45  ;;  %v223_v9 = vadd.s32 4294967240, %v576_v45 }
  0x10   :  { %69 = vadd.xlane.f32.xlu0 %v47_v18  ;;  %v184_v51 = vsub.s32 %v181_v47, %v578_v46  ;;  %v191_v54 = vsub.s32 %v188_v49, %v578_v46  ;;  %v198_v59 = vsub.s32 %v195_v53, %v578_v46  ;;  %v230_v14 = vadd.s32 4294967232, %v576_v45 }
  0x11   :  { %71 = vadd.xlane.f32.xlu1 %v48_v19  ;;  %v205_v0 = vsub.s32 %v202_v58, %v578_v46  ;;  %v212_v5 = vsub.s32 %v209_v63, %v578_v46  ;;  %v219_v10 = vsub.s32 %v216_v4, %v578_v46  ;;  %v226_v15 = vsub.s32 %v223_v9, %v578_v46 }
  0x12   :  { %v237_v19 = vadd.s32 4294967224, %v576_v45  ;;  %v233_v20 = vsub.s32 %v230_v14, %v578_v46  ;;  %v251_v29 = vadd.s32 4294967208, %v576_v45  ;;  %v258_v34 = vadd.s32 4294967200, %v576_v45 }
  0x13   :  { %vm249_vm10 = vcmask 720512   ;;  %vm256_vm11 = vcmask 786112   ;;  %v272_v44 = vadd.s32 4294967184, %v576_v45  ;;  %vm263_vm12 = vcmask 851712  }
  0x14   :  { %432 = vmatpush3.bf16.xpose.msra.mxu0 %v431_v21  ;;  %73 = vadd.xlane.f32.xlu0 %v49_v23  ;;  %v240_v25 = vsub.s32 %v237_v19, %v578_v46  ;;  %v254_v35 = vsub.s32 %v251_v29, %v578_v46  ;;  %vm270_vm13 = vcmask 917312   ;;  %vm277_vm14 = vcmask 982912  }
  0x15   :  { %433 = vmatprep.subr.bf16.mxu0 %v488_v3  ;;  %75 = vadd.xlane.f32.xlu1 %v50_v24  ;;  %v244_v24 = vadd.s32 4294967216, %v576_v45  ;;  %vm284_vm15 = vcmask 1048512  }
  0x18   :  { %77 = vadd.xlane.f32.xlu0 %v51_v27 }
  0x19   :  { %79 = vadd.xlane.f32.xlu1 %v52_v28 }
  0x1c   :  { %435 = vmatpush3.bf16.xpose.msra.mxu0 %v434_v30  ;;  %81 = vadd.xlane.f32.xlu0 %v53_v32  ;;  %v247_v30 = vsub.s32 %v244_v24, %v578_v46 }
  0x1d   :  { %436 = vmatprep.subr.bf16.mxu0 %v488_v3  ;;  %83 = vadd.xlane.f32.xlu1 %v54_v33 }
  0x20   :  { %85 = vadd.xlane.f32.xlu0 %v55_v36 }
  0x21   :  { %87 = vadd.xlane.f32.xlu1 %v56_v37 }
  0x24   :  { %438 = vmatpush3.bf16.xpose.msra.mxu0 %v437_v39  ;;  %39 = vadd.xlane.f32.xlu0 %v38_v40  ;;  %v265_v39 = vadd.s32 4294967192, %v576_v45  ;;  %v261_v40 = vsub.s32 %v258_v34, %v578_v46 }
  0x25   :  { %439 = vmatprep.subr.bf16.mxu0 %v488_v3 }
  0x26   :  { %v268_v47 = vsub.s32 %v265_v39, %v578_v46 }
  0x2c   :  { %441 = vmatpush3.bf16.xpose.msra.mxu0 %v440_v41 }
  0x2d   :  { %442 = vmatprep.subr.bf16.mxu0 %v488_v3 }
  0x34   :  { %444 = vmatpush3.bf16.xpose.msra.mxu0 %v443_v42 }
  0x35   :  { %445 = vmatprep.subr.bf16.mxu0 %v488_v3 }
  0x3c   :  { %447 = vmatpush3.bf16.xpose.msra.mxu0 %v446_v43 }
  0x43   :  { %422 = vmatmul.mubr.f32.vlgmr.msra.gmra.mrb[0].mxu0 %v19_v38 }
  0x91   :  { %v58_v48 = vpop.xlane.xlu0 %57 }
  0x92   :  { %v62_v52 = vpop.xlane.xlu1 %61  ;;  %v180_v56 = vrot.slane %v58_v48, %v179_v50 }
  0x93   :  { %v192_v60 = vrot.slane %v62_v52, %v191_v54  ;;  %v275_v52 = vsub.s32 %v272_v44, %v578_v46 }
  0x95   :  { %v60_v55 = vpop.xlane.xlu0 %59 }
  0x96   :  { %v185_v57 = vrot.slane %v60_v55, %v184_v51  ;;  %v64_v61 = vpop.xlane.xlu1 %63  ;;  %v279_v51 = vadd.s32 4294967176, %v576_v45 }
  0x97   :  { %v199_v1 = vrot.slane %v64_v61, %v198_v59 }
  0x98   :  { %v187_v62 = vsel %vm186_vm1, %v185_v57, %v180_v56  ;;  %v282_v56 = vsub.s32 %v279_v51, %v578_v46  ;;  %vm310_vm1 = vcmp.lt.s32.totalorder %v576_v45, 16 }
  0x99   :  { %v66_v2 = vpop.xlane.xlu0 %65  ;;  %v194_v3 = vsel %vm193_vm2, %v192_v60, %v187_v62 }
  0x9a   :  { %v206_v6 = vrot.slane %v66_v2, %v205_v0  ;;  %v68_v7 = vpop.xlane.xlu1 %67  ;;  %v201_v8 = vsel %vm200_vm3, %v199_v1, %v194_v3 }
  0x9b   :  { %v213_v11 = vrot.slane %v68_v7, %v212_v5 }
  0x9c   :  { %v208_v13 = vsel %vm207_vm4, %v206_v6, %v201_v8 }
  0x9d   :  { %v70_v12 = vpop.xlane.xlu0 %69  ;;  %v215_v18 = vsel %vm214_vm5, %v213_v11, %v208_v13 }
  0x9e   :  { %v220_v16 = vrot.slane %v70_v12, %v219_v10  ;;  %v72_v17 = vpop.xlane.xlu1 %71 }
  0x9f   :  { %v227_v21 = vrot.slane %v72_v17, %v226_v15 }
  0xa0   :  { %v222_v23 = vsel %vm221_vm6, %v220_v16, %v215_v18 }
  0xa1   :  { %v74_v22 = vpop.xlane.xlu0 %73  ;;  %v229_v28 = vsel %vm228_vm7, %v227_v21, %v222_v23 }
  0xa2   :  { %v234_v26 = vrot.slane %v74_v22, %v233_v20  ;;  %v76_v27 = vpop.xlane.xlu1 %75 }
  0xa3   :  { %v241_v31 = vrot.slane %v76_v27, %v240_v25 }
  0xa4   :  { %v236_v33 = vsel %vm235_vm8, %v234_v26, %v229_v28 }
  0xa5   :  { %v78_v32 = vpop.xlane.xlu0 %77  ;;  %v243_v38 = vsel %vm242_vm9, %v241_v31, %v236_v33  ;;  %v371_v33 = vld [vmem:[%s637_s2] ss:$0 sm:$0xff] }
  0xa6   :  { %v248_v36 = vrot.slane %v78_v32, %v247_v30  ;;  %v80_v37 = vpop.xlane.xlu1 %79 }
  0xa7   :  { %v255_v41 = vrot.slane %v80_v37, %v254_v35 }
  0xa8   :  { %v250_v43 = vsel %vm249_vm10, %v248_v36, %v243_v38 }
  0xa9   :  { %v82_v42 = vpop.xlane.xlu0 %81  ;;  %v257_v50 = vsel %vm256_vm11, %v255_v41, %v250_v43 }
  0xaa   :  { %v262_v48 = vrot.slane %v82_v42, %v261_v40  ;;  %v84_v49 = vpop.xlane.xlu1 %83 }
  0xab   :  { %v269_v53 = vrot.slane %v84_v49, %v268_v47 }
  0xac   :  { %v264_v55 = vsel %vm263_vm12, %v262_v48, %v257_v50 }
  0xad   :  { %v86_v54 = vpop.xlane.xlu0 %85  ;;  %v271_v59 = vsel %vm270_vm13, %v269_v53, %v264_v55 }
  0xae   :  { %v276_v57 = vrot.slane %v86_v54, %v275_v52  ;;  %v88_v58 = vpop.xlane.xlu1 %87 }
  0xaf   :  { %v283_v60 = vrot.slane %v88_v58, %v282_v56 }
  0xb0   :  { %v278_v61 = vsel %vm277_vm14, %v276_v57, %v271_v59 }
  0xb1   :  { %v285_v62 = vsel %vm284_vm15, %v283_v60, %v278_v61  ;;  %v40_v63 = vpop.xlane.xlu0 %39 }
  0xb2   :  { %v299_v1 = vadd.f32 %v285_v62, %v40_v63 }
 0x116   :  { %v155_v0 = vpop.f32.mrb[0].mxu0 }
 0x117   :  { %v300_v2 = vmul.f32 2.0, %v155_v0  ;;  %v423_v3 = vpop.f32.mrb[1].mxu0 }
 0x119   :  { %v301_v4 = vsub.f32 %v299_v1, %v300_v2 }
 0x11b   :  { %v302_v5 = vmax.f32 %v301_v4, 0.0 }
 0x11d   :  { %458 = vrsqrt.f32 %v302_v5  ;;  %vm305_vm0 = vcmp.eq.f32.partialorder %v302_v5, inf  ;;  %v308_v46 = vand.u32 2147483648, %v302_v5  ;;  %vm307_vm2 = vcmp.eq.f32.partialorder %v302_v5, 0.0 }
 0x127   :  { %v459_v6 = vpop.eup %458 }
 0x128   :  { %v304_v7 = vmul.f32 %v459_v6, %v302_v5 }
 0x12a   :  { %v306_v8 = vsel %vm305_vm0, %v302_v5, %v304_v7 }
 0x12b   :  { %v309_v9 = vsel %vm307_vm2, %v308_v46, %v306_v8 }
 0x12c   :  { %v311_v10 = vsel %vm310_vm1, %v309_v9, 0.0 }
 0x12d   :  { %312 = vadd.xlane.f32.xlu1 %v311_v10 }
 0x1ba   :  { %v313_v11 = vpop.xlane.xlu1 %312 }
 0x1bb   :  { %v314_v12 = vrot.slane %v313_v11, 4 }
 0x1bd   :  { %v315_v13 = vadd.f32 %v314_v12, %v313_v11 }
 0x1bf   :  { %v316_v14 = vrot.slane %v315_v13, 2 }
 0x1c1   :  { %v317_v15 = vadd.f32 %v316_v14, %v315_v13 }
 0x1c3   :  { %v318_v16 = vrot.slane %v317_v15, 1 }
 0x1c5   :  { %v319_v17 = vadd.f32 %v318_v16, %v317_v15 }
 0x1c7   :  { %448 = vpush %v319_v17 }
 0x1f8   :  { %s449_s0 = spop %448 }
 0x1f9   :  { %s323_s1 = smul.f32 0.0078125, %s449_s0 }
 0x1fb   :  { %v324_v18 = vstv %s323_s1 }
 0x1fc   :  { %v325_v19 = vsub.f32 %v309_v9, %v324_v18 }
 0x1fe   :  { %v326_v20 = vmul.f32 %v325_v19, %v325_v19 }
 0x200   :  { %v327_v21 = vsel %vm310_vm1, %v326_v20, 0.0 }
 0x201   :  { %328 = vadd.xlane.f32.xlu0 %v327_v21 }
 0x28e   :  { %v329_v22 = vpop.xlane.xlu0 %328 }
 0x28f   :  { %v330_v23 = vrot.slane %v329_v22, 4 }
 0x291   :  { %v331_v24 = vadd.f32 %v330_v23, %v329_v22 }
 0x293   :  { %v332_v25 = vrot.slane %v331_v24, 2 }
 0x295   :  { %v333_v26 = vadd.f32 %v332_v25, %v331_v24 }
 0x297   :  { %v334_v27 = vrot.slane %v333_v26, 1 }
 0x299   :  { %v335_v28 = vadd.f32 %v334_v27, %v333_v26 }
 0x29b   :  { %450 = vpush %v335_v28 }
 0x2cc   :  { %s451_s23 = spop %450 }
 0x2cd   :  { %s339_s24 = smul.f32 0.007874016, %s451_s23 }
 0x2cf   :  { %v340_v29 = vstv %s339_s24 }
 0x2d0   :  { %460 = vrcp.f32 %v340_v29 }
 0x2da   :  { %v461_v30 = vpop.eup %460 }
 0x2db   :  { %452 = vpush %v461_v30 }
 0x30c   :  { %s453_s28 = spop %452 }
 0x30d   :  { %s344_s29 = smul.f32 %s453_s28, %s343_s27 }
 0x30f   :  { %v345_v45 = vstv %s344_s29 }
 0x310   :  { %v346_v31 = vmul.f32 %v345_v45, %v326_v20 }
 0x312   :  { %v347_v32 = vmul.f32 1.442695, %v346_v31 }
 0x314   :  { %462 = vpow2.f32 %v347_v32 }
 0x31e   :  { %v463_v34 = vpop.eup %462 }
 0x31f   :  { %v355_v35 = vadd.f32 %v463_v34, %v371_v33 }
 0x321   :  { %356 = vst [vmem:[#allocation3] sm:$0xff] %v355_v35 }
 0x322   :  { %475 = shalt.err (!%p472_p4)
}
 0x323   :  { %s476_s10 = scalar_lea.hbm %s639_s4, 128 }
 0x324   :  { %p477_p5 = scmp.ne.s32.totalorder %s639_s4, %s476_s10  ;;  %p480_p6 = scmp.lt.u32.totalorder %s476_s10, %s639_s4 }
 0x326   :  { %p482_p7 = pnand %p480_p6, %p477_p5 }
 0x328   :  { %485 = shalt.err (!%p482_p7)
}
 0x329   :  { %366 = dma.vmem_to_hbm [thread:$0]  %s364_s7, 128, %s639_s4, [#allocation4]  }
 0x32a   :  { %486 = dma.done.wait [#allocation4], 128  }
 0x32b   :  { %487 = vsyncadd [#allocation4], 4294967168 }
 0x32c   :  { %370 = vsyncpa [#allocation4], 1 }

</bundles_post_ra>
